<compile_context>
chip_gen: v5e
topology: v5e:2x2
jax: 0.10.0
libtpu: 0.0.40
codegen_flags: <defaults>
</compile_context>

<pallas_src>
import itertools
from functools import partial

import jax
import jax.numpy as jnp
import numpy as np
from jax import lax
from jax.experimental import pallas as pl
from jax.experimental.pallas import tpu as pltpu


def _round_up(n, m):
    return ((n + m - 1) // m) * m


def _build_chunks(pairs, max_pairs_per_chunk):
    """Group consecutive pairs that share the same left field into chunks of at
    most `max_pairs_per_chunk` pairs. Returns tuples (left_field, js, col0)."""
    chunks = []
    col = 0
    idx = 0
    n = len(pairs)
    while idx < n:
        fi = pairs[idx][0]
        js = []
        while idx < n and pairs[idx][0] == fi and len(js) < max_pairs_per_chunk:
            js.append(pairs[idx][1])
            idx += 1
        chunks.append((fi, tuple(js), col))
        col += len(js)
    return tuple(chunks)


def _bilinear_interaction_kernel(x_ref,     # (bt, F*E)  bf16  field slab of this batch tile
                                 w_ref,     # (E, P*E)   bf16  concat of W_k^T, VMEM-resident
                                 mlp_ref,   # (P, M)     f32   mlp_w^T, VMEM-resident
                                 out_ref,   # (bt, M)    f32
                                 pmat_ref,  # (bt, P)    f32   scratch: pair-value matrix
                                 *, chunks, embed):
    E = embed
    # Statically unrolled loop over pair groups (pairs sharing a left field):
    # one wide MXU matmul per group, all slices at static offsets.
    for fi, js, col0 in chunks:
        c = len(js)
        xi = x_ref[:, fi * E:(fi + 1) * E]                      # (bt, E)   bf16
        w_blk = w_ref[:, col0 * E:(col0 + c) * E]               # (E, c*E)  bf16
        # nn.Linear(E, E, bias=False) for all c pairs at once: bf16 MXU, f32 acc.
        t = jnp.dot(xi, w_blk, preferred_element_type=jnp.float32)   # (bt, c*E) f32
        if c > 1:
            xj = jnp.concatenate([x_ref[:, j * E:(j + 1) * E] for j in js], axis=-1)
        else:
            xj = x_ref[:, js[0] * E:(js[0] + 1) * E]            # (bt, c*E) bf16
        prod = t * xj.astype(jnp.float32)                       # (bt, c*E) f32
        # matmul(t, v_j^T) on matching batch rows == per-pair dot product over E.
        cols = [jnp.sum(prod[:, k * E:(k + 1) * E], axis=-1, keepdims=True)
                for k in range(c)]
        blk = jnp.concatenate(cols, axis=-1) if c > 1 else cols[0]   # (bt, c) f32
        pmat_ref[:, col0:col0 + c] = blk                         # static column store
    # Final nn.Linear(P, mlp_dim, bias=False): one MXU matmul per batch tile,
    # f32 x f32 at highest precision (keeps ~1e-6 relative error).
    out_ref[...] = jnp.dot(pmat_ref[...], mlp_ref[...],
                           preferred_element_type=jnp.float32,
                           precision=lax.Precision.HIGHEST)


def bilinear_interaction_plus(x, w_pairs, mlp_w, pairs, *, b_tile=512, group_lanes=256):
    """x: (B, F, E) f32; w_pairs: (P, E, E) f32 in nn.Linear (out, in) layout;
    mlp_w: (M, P) f32; pairs: static list of (i, j) field-index tuples.
    Returns (B, M) f32."""
    B, F, E = x.shape
    P = len(pairs)
    assert w_pairs.shape == (P, E, E)
    M = mlp_w.shape[0]

    # ---- host-side layout/dtype glue (cheap; no per-pair duplication of x) ----
    xf = x.astype(jnp.bfloat16).reshape(B, F * E)            # field i -> lanes [i*E, (i+1)*E)
    # Wcat[a, k*E + b] = W_k^T[a, b] = w_pairs[k, b, a]  -> (E, P*E)
    w_cat = jnp.transpose(w_pairs, (2, 0, 1)).reshape(E, P * E).astype(jnp.bfloat16)
    mlp_t = jnp.transpose(mlp_w).astype(jnp.float32)         # (P, M)

    # ---- batch tiling: multiple of 8 sublanes; prefer >=2 tiles (v7x megacore) ----
    bp = _round_up(B, 8)
    bt = min(b_tile, bp)
    if bp > 8 and bp // bt < 2:
        bt = _round_up(pl.cdiv(bp, 2), 8)
    b_pad = _round_up(bp, bt)
    if b_pad != B:
        xf = jnp.pad(xf, ((0, b_pad - B), (0, 0)))
    num_bt = b_pad // bt

    # ---- static pair grouping: pairs sharing a left field -> one wide matmul ----
    # TODO(synk): pick group_lanes per generation (128 on v5e, 256 on v6e/v7x).
    g_max = max(1, group_lanes // E)
    chunks = _build_chunks(pairs, g_max)

    out = pl.pallas_call(
        partial(_bilinear_interaction_kernel, chunks=chunks, embed=E),
        out_shape=jax.ShapeDtypeStruct((b_pad, M), jnp.float32),
        grid_spec=pltpu.PrefetchScalarGridSpec(
            num_scalar_prefetch=0,
            grid=(num_bt,),
            in_specs=[
                # Field slab: re-DMA'd only when the batch tile changes.
                pl.BlockSpec((bt, F * E), lambda b: (b, 0)),
                # Concatenated pair weights: constant index -> fetched once, resident.
                pl.BlockSpec((E, P * E), lambda b: (0, 0)),
                # mlp weights: resident.
                pl.BlockSpec((P, M), lambda b: (0, 0)),
            ],
            out_specs=pl.BlockSpec((bt, M), lambda b: (b, 0)),
            scratch_shapes=[pltpu.VMEM((bt, P), jnp.float32)],
        ),
        compiler_params=pltpu.CompilerParams(
            dimension_semantics=("parallel",),
            vmem_limit_bytes=32 * 1024 * 1024),
    )(xf, w_cat, mlp_t)
    return out[:B]


def reference(x, w_pairs, mlp_w, pairs):
    """Numpy float64 mirror of the PyTorch forward (bilinear_type='interaction'),
    on bf16-rounded inputs to match the kernel's input precision."""
    xq = np.asarray(x.astype(jnp.bfloat16).astype(jnp.float32), dtype=np.float64)
    wq = np.asarray(w_pairs.astype(jnp.bfloat16).astype(jnp.float32), dtype=np.float64)
    mw = np.asarray(mlp_w, dtype=np.float64)
    outs = []
    for k, (i, j) in enumerate(pairs):
        vi = xq[:, i, :]                       # (B, E)
        vj = xq[:, j, :]                       # (B, E)
        t = vi @ wq[k].T                       # nn.Linear(E, E, bias=False)
        outs.append(np.sum(t * vj, axis=-1))   # matmul(t, vj^T) per-batch scalar
    pmat = np.stack(outs, axis=1)              # (B, P) == torch.cat(p, 1).squeeze()
    return pmat @ mw.T                         # nn.Linear(P, mlp_dim, bias=False)


if __name__ == "__main__":
    B, F, E, MLP = 2, 4, 32, 128
    pairs = list(itertools.combinations(range(F), 2))
    P = len(pairs)  # F*(F-1)//2 = 6

    key = jax.random.PRNGKey(0)
    kx, kw, km = jax.random.split(key, 3)
    x = jax.random.normal(kx, (B, F, E), dtype=jnp.float32)
    w_pairs = 0.1 * jax.random.normal(kw, (P, E, E), dtype=jnp.float32)   # per-pair Linear(E,E)
    mlp_w = 0.1 * jax.random.normal(km, (MLP, P), dtype=jnp.float32)      # Linear(P, MLP)

    out = bilinear_interaction_plus(x, w_pairs, mlp_w, pairs)
    out = jax.block_until_ready(out)

    ref = reference(x, w_pairs, mlp_w, pairs)
    assert out.shape == (B, MLP)
    np.testing.assert_allclose(np.asarray(out, dtype=np.float64), ref,
                               rtol=1e-4, atol=1e-4)
    print("KERNEL_OK")
</pallas_src>

<mosaic_0001>
module attributes {stable_mosaic.version = 11 : i64} {
  func.func @_bilinear_interaction_kernel(%arg0: i32, %arg1: memref<8x128xbf16, #tpu.memory_space<vmem>>, %arg2: memref<32x192xbf16, #tpu.memory_space<vmem>>, %arg3: memref<6x128xf32, #tpu.memory_space<vmem>>, %arg4: memref<8x128xf32, #tpu.memory_space<vmem>>, %arg5: memref<8x6xf32, #tpu.memory_space<vmem>>) attributes {dimension_semantics = [#tpu.dimension_semantics<parallel>], iteration_bounds = array<i64: 1>, scalar_prefetch = 0 : i64, scratch_operands = 1 : i64, tpu.core_type = #tpu.core_type<tc>, window_params = [{transform_indices = @transform_0, window_bounds = array<i64: 8, 128>}, {pipeline_mode = #tpu.pipeline_mode<synchronous>, transform_indices = @transform_1, window_bounds = array<i64: 32, 192>}, {pipeline_mode = #tpu.pipeline_mode<synchronous>, transform_indices = @transform_2, window_bounds = array<i64: 6, 128>}, {transform_indices = @transform_3, window_bounds = array<i64: 8, 128>}]} {
    %c0 = arith.constant 0 : index
    %c0_0 = arith.constant 0 : index
    %0 = vector.load %arg1[%c0, %c0_0] : memref<8x128xbf16, #tpu.memory_space<vmem>>, vector<8x32xbf16>
    %c0_1 = arith.constant 0 : index
    %c0_2 = arith.constant 0 : index
    %1 = vector.load %arg2[%c0_1, %c0_2] : memref<32x192xbf16, #tpu.memory_space<vmem>>, vector<32x96xbf16>
    %cst = arith.constant dense<0.000000e+00> : vector<8x96xf32>
    %2 = tpu.matmul %0, %1, %cst {dimension_numbers = #tpu.dot_dimension_numbers<[1], [0], [0], [1], [0, 0, 1, 1], [], []>} : vector<8x32xbf16>, vector<32x96xbf16>, vector<8x96xf32> -> vector<8x96xf32>
    %c0_3 = arith.constant 0 : index
    %c32 = arith.constant 32 : index
    %3 = vector.load %arg1[%c0_3, %c32] : memref<8x128xbf16, #tpu.memory_space<vmem>>, vector<8x32xbf16>
    %c0_4 = arith.constant 0 : index
    %c64 = arith.constant 64 : index
    %4 = vector.load %arg1[%c0_4, %c64] : memref<8x128xbf16, #tpu.memory_space<vmem>>, vector<8x32xbf16>
    %c0_5 = arith.constant 0 : index
    %c96 = arith.constant 96 : index
    %5 = vector.load %arg1[%c0_5, %c96] : memref<8x128xbf16, #tpu.memory_space<vmem>>, vector<8x32xbf16>
    %6 = tpu.concatenate %3, %4, %5 in 1 : vector<8x32xbf16>, vector<8x32xbf16>, vector<8x32xbf16> -> vector<8x96xbf16>
    %7 = arith.extf %6 : vector<8x96xbf16> to vector<8x96xf32>
    %8 = arith.mulf %2, %7 : vector<8x96xf32>
    %9 = vector.extract_strided_slice %8 {offsets = [0, 0], sizes = [8, 32], strides = [1, 1]} : vector<8x96xf32> to vector<8x32xf32>
    %cst_6 = arith.constant dense<0.000000e+00> : vector<8xf32>
    %10 = vector.multi_reduction <add>, %9, %cst_6 [1] : vector<8x32xf32> to vector<8xf32>
    %11 = vector.shape_cast %10 : vector<8xf32> to vector<8x1xf32>
    %12 = vector.extract_strided_slice %8 {offsets = [0, 32], sizes = [8, 32], strides = [1, 1]} : vector<8x96xf32> to vector<8x32xf32>
    %cst_7 = arith.constant dense<0.000000e+00> : vector<8xf32>
    %13 = vector.multi_reduction <add>, %12, %cst_7 [1] : vector<8x32xf32> to vector<8xf32>
    %14 = vector.shape_cast %13 : vector<8xf32> to vector<8x1xf32>
    %15 = vector.extract_strided_slice %8 {offsets = [0, 64], sizes = [8, 32], strides = [1, 1]} : vector<8x96xf32> to vector<8x32xf32>
    %cst_8 = arith.constant dense<0.000000e+00> : vector<8xf32>
    %16 = vector.multi_reduction <add>, %15, %cst_8 [1] : vector<8x32xf32> to vector<8xf32>
    %17 = vector.shape_cast %16 : vector<8xf32> to vector<8x1xf32>
    %18 = tpu.concatenate %11, %14, %17 in 1 : vector<8x1xf32>, vector<8x1xf32>, vector<8x1xf32> -> vector<8x3xf32>
    %c0_9 = arith.constant 0 : index
    %c0_10 = arith.constant 0 : index
    %19 = vector.load %arg5[%c0_9, %c0_10] : memref<8x6xf32, #tpu.memory_space<vmem>>, vector<8x3xf32>
    tpu.vector_store %arg5[%c0_9, %c0_10], %18 {strides = array<i32>} : memref<8x6xf32, #tpu.memory_space<vmem>>, vector<8x3xf32>,
    %c0_11 = arith.constant 0 : index
    %c32_12 = arith.constant 32 : index
    %20 = vector.load %arg1[%c0_11, %c32_12] : memref<8x128xbf16, #tpu.memory_space<vmem>>, vector<8x32xbf16>
    %c0_13 = arith.constant 0 : index
    %c96_14 = arith.constant 96 : index
    %21 = vector.load %arg2[%c0_13, %c96_14] : memref<32x192xbf16, #tpu.memory_space<vmem>>, vector<32x64xbf16>
    %cst_15 = arith.constant dense<0.000000e+00> : vector<8x64xf32>
    %22 = tpu.matmul %20, %21, %cst_15 {dimension_numbers = #tpu.dot_dimension_numbers<[1], [0], [0], [1], [0, 0, 1, 1], [], []>} : vector<8x32xbf16>, vector<32x64xbf16>, vector<8x64xf32> -> vector<8x64xf32>
    %c0_16 = arith.constant 0 : index
    %c64_17 = arith.constant 64 : index
    %23 = vector.load %arg1[%c0_16, %c64_17] : memref<8x128xbf16, #tpu.memory_space<vmem>>, vector<8x32xbf16>
    %c0_18 = arith.constant 0 : index
    %c96_19 = arith.constant 96 : index
    %24 = vector.load %arg1[%c0_18, %c96_19] : memref<8x128xbf16, #tpu.memory_space<vmem>>, vector<8x32xbf16>
    %25 = tpu.concatenate %23, %24 in 1 : vector<8x32xbf16>, vector<8x32xbf16> -> vector<8x64xbf16>
    %26 = arith.extf %25 : vector<8x64xbf16> to vector<8x64xf32>
    %27 = arith.mulf %22, %26 : vector<8x64xf32>
    %28 = vector.extract_strided_slice %27 {offsets = [0, 0], sizes = [8, 32], strides = [1, 1]} : vector<8x64xf32> to vector<8x32xf32>
    %cst_20 = arith.constant dense<0.000000e+00> : vector<8xf32>
    %29 = vector.multi_reduction <add>, %28, %cst_20 [1] : vector<8x32xf32> to vector<8xf32>
    %30 = vector.shape_cast %29 : vector<8xf32> to vector<8x1xf32>
    %31 = vector.extract_strided_slice %27 {offsets = [0, 32], sizes = [8, 32], strides = [1, 1]} : vector<8x64xf32> to vector<8x32xf32>
    %cst_21 = arith.constant dense<0.000000e+00> : vector<8xf32>
    %32 = vector.multi_reduction <add>, %31, %cst_21 [1] : vector<8x32xf32> to vector<8xf32>
    %33 = vector.shape_cast %32 : vector<8xf32> to vector<8x1xf32>
    %34 = tpu.concatenate %30, %33 in 1 : vector<8x1xf32>, vector<8x1xf32> -> vector<8x2xf32>
    %c0_22 = arith.constant 0 : index
    %c3 = arith.constant 3 : index
    %35 = vector.load %arg5[%c0_22, %c3] : memref<8x6xf32, #tpu.memory_space<vmem>>, vector<8x2xf32>
    tpu.vector_store %arg5[%c0_22, %c3], %34 {strides = array<i32>} : memref<8x6xf32, #tpu.memory_space<vmem>>, vector<8x2xf32>,
    %c0_23 = arith.constant 0 : index
    %c64_24 = arith.constant 64 : index
    %36 = vector.load %arg1[%c0_23, %c64_24] : memref<8x128xbf16, #tpu.memory_space<vmem>>, vector<8x32xbf16>
    %c0_25 = arith.constant 0 : index
    %c160 = arith.constant 160 : index
    %37 = vector.load %arg2[%c0_25, %c160] : memref<32x192xbf16, #tpu.memory_space<vmem>>, vector<32x32xbf16>
    %cst_26 = arith.constant dense<0.000000e+00> : vector<8x32xf32>
    %38 = tpu.matmul %36, %37, %cst_26 {dimension_numbers = #tpu.dot_dimension_numbers<[1], [0], [0], [1], [0, 0, 1, 1], [], []>} : vector<8x32xbf16>, vector<32x32xbf16>, vector<8x32xf32> -> vector<8x32xf32>
    %c0_27 = arith.constant 0 : index
    %c96_28 = arith.constant 96 : index
    %39 = vector.load %arg1[%c0_27, %c96_28] : memref<8x128xbf16, #tpu.memory_space<vmem>>, vector<8x32xbf16>
    %40 = arith.extf %39 : vector<8x32xbf16> to vector<8x32xf32>
    %41 = arith.mulf %38, %40 : vector<8x32xf32>
    %cst_29 = arith.constant dense<0.000000e+00> : vector<8xf32>
    %42 = vector.multi_reduction <add>, %41, %cst_29 [1] : vector<8x32xf32> to vector<8xf32>
    %43 = vector.shape_cast %42 : vector<8xf32> to vector<8x1xf32>
    %c0_30 = arith.constant 0 : index
    %c5 = arith.constant 5 : index
    %44 = vector.load %arg5[%c0_30, %c5] : memref<8x6xf32, #tpu.memory_space<vmem>>, vector<8x1xf32>
    tpu.vector_store %arg5[%c0_30, %c5], %43 {strides = array<i32>} : memref<8x6xf32, #tpu.memory_space<vmem>>, vector<8x1xf32>,
    %c0_31 = arith.constant 0 : index
    %c0_32 = arith.constant 0 : index
    %45 = vector.load %arg5[%c0_31, %c0_32] : memref<8x6xf32, #tpu.memory_space<vmem>>, vector<8x6xf32>
    %c0_33 = arith.constant 0 : index
    %c0_34 = arith.constant 0 : index
    %46 = vector.load %arg3[%c0_33, %c0_34] : memref<6x128xf32, #tpu.memory_space<vmem>>, vector<6x128xf32>
    %cst_35 = arith.constant dense<0.000000e+00> : vector<8x128xf32>
    %47 = tpu.matmul %45, %46, %cst_35 {dimension_numbers = #tpu.dot_dimension_numbers<[1], [0], [0], [1], [0, 0, 1, 1], [], []>, precision = #tpu.contract_precision<fp32>} : vector<8x6xf32>, vector<6x128xf32>, vector<8x128xf32> -> vector<8x128xf32>
    %c0_36 = arith.constant 0 : index
    %c0_37 = arith.constant 0 : index
    %48 = vector.load %arg4[%c0_36, %c0_37] : memref<8x128xf32, #tpu.memory_space<vmem>>, vector<8x128xf32>
    tpu.vector_store %arg4[%c0_36, %c0_37], %47 {strides = array<i32>} : memref<8x128xf32, #tpu.memory_space<vmem>>, vector<8x128xf32>,
    return
  }
  func.func @transform_0(%arg0: i32) -> (i32, i32) {
    %c0_i32 = arith.constant 0 : i32
    %c0_i32_0 = arith.constant 0 : i32
    return %arg0, %c0_i32 : i32, i32
  }
  func.func @transform_1(%arg0: i32) -> (i32, i32) {
    %c0_i32 = arith.constant 0 : i32
    %c0_i32_0 = arith.constant 0 : i32
    %c0_i32_1 = arith.constant 0 : i32
    return %c0_i32, %c0_i32_0 : i32, i32
  }
  func.func @transform_2(%arg0: i32) -> (i32, i32) {
    %c0_i32 = arith.constant 0 : i32
    %c0_i32_0 = arith.constant 0 : i32
    %c0_i32_1 = arith.constant 0 : i32
    return %c0_i32, %c0_i32_0 : i32, i32
  }
  func.func @transform_3(%arg0: i32) -> (i32, i32) {
    %c0_i32 = arith.constant 0 : i32
    %c0_i32_0 = arith.constant 0 : i32
    return %arg0, %c0_i32 : i32, i32
  }
}

</mosaic_0001>

<bundles_post_ra>
// kernel: tpu_custom_call.1
= control target key start
LH: loop header
LB: loop body
LE: loop exit
PB: predicated region body
PF: predicated region fallthrough
CT: control target
= control target key end

     0   :  { %8 = vsyncpa [#allocation4], 0  ;;  %s651_s0 = inlined_call_operand.hbm [shape: bf16[8,128], index: 0, kind: input, shape index: {}]   ;;  %s652_s1 = inlined_call_operand.hbm [shape: bf16[32,192], index: 1, kind: input, shape index: {}]   ;;  %s653_s2 = inlined_call_operand.hbm [shape: f32[6,128], index: 2, kind: input, shape index: {}]   ;;  %s654_s3 = inlined_call_operand.hbm [shape: f32[8,128], index: 3, kind: output, shape index: {}]  }
   0x1   :  { %9 = vsyncpa [#allocation7], 0  ;;  %s26_s14 = sshll.u32 %s652_s1, 4  ;;  %s27_s14 = int_to_ptr.hbm [resolvable:$true] %s26_s14 }
   0x2   :  { %10 = vsyncpa [#allocation5], 0  ;;  %s587_s15 = smov [#allocation6]   ;;  %s16_s19 = sshll.u32 %s651_s0, 4  ;;  %s17_s19 = int_to_ptr.hbm [resolvable:$true] %s16_s19 }
   0x3   :  { %s28_s16 = sshll.u32 %s587_s15, 4  ;;  %s588_s20 = smov 128   ;;  %s29_s16 = int_to_ptr.vmem [resolvable:$true] %s28_s16 }
   0x4   :  { %s589_s21 = smov 8   ;;  %s590_s22 = smov [#allocation3]  }
   0x5   :  { %34 = dma.hbm_to_vmem [thread:$0]  %s27_s14, 512, %s29_s16, [#allocation7], %s588_s20, %s588_s20, %s589_s21  }
   0x6   :  { %s18_s23 = sshll.u32 %s590_s22, 4  ;;  %s40_s26 = sshll.u32 %s653_s2, 4  ;;  %s19_s23 = int_to_ptr.vmem [resolvable:$true] %s18_s23  ;;  %s41_s26 = int_to_ptr.hbm [resolvable:$true] %s40_s26 }
   0x7   :  { %21 = dma.hbm_to_vmem [thread:$0]  %s17_s19, 64, %s19_s23, [#allocation4]  }
   0x8   :  { %s591_s1 = smov [#allocation8]  }
   0x9   :  { %s42_s27 = sshll.u32 %s591_s1, 4  ;;  %s43_s27 = int_to_ptr.vmem [resolvable:$true] %s42_s27 }
   0xa   :  { %45 = dma.hbm_to_vmem [thread:$0]  %s41_s26, 128, %s43_s27, [#allocation7]  }
   0xb   :  { %581 = dma.done.wait [#allocation4], 64  }
   0xc   :  { %582 = vsyncadd [#allocation4], 4294967232 }
   0xd   :  { %583 = dma.done.wait [#allocation7], 640  }
   0xe   :  { %584 = vsyncadd [#allocation7], 4294966656  ;;  %v451_v0 = vld [vmem:[#allocation6 + $0x10] sm:$0xf]  ;;  %v472_v1 = vld [vmem:[#allocation6 + $0x14] sm:$0xf0] }
   0xf   :  { %v443_v2 = vld [vmem:[#allocation6] sm:$0xf]  ;;  %v452_v3 = vor.u32 %v472_v1, %v451_v0  ;;  %v470_v4 = vld [vmem:[#allocation6 + $0x4] sm:$0xf0]  ;;  %v126_v6 = vld [vmem:[#allocation3] sm:$0xf] }
  0x10   :  { %v444_v5 = vor.u32 %v470_v4, %v443_v2  ;;  %s592_s0 = smov 32   ;;  %v132_v7 = vunpack.c.l.b16 %v126_v6  ;;  %v438_v8 = vld [vmem:[#allocation6 + $0x10] sm:$0xf]  ;;  %v468_v9 = vld [vmem:[#allocation6 + $0x14] sm:$0xf0]  ;;  %s593_s2 = smov 96  }
  0x11   :  { %156 = vrot.lane.b32.xlu0 %v452_v3, %s592_s0  ;;  %v434_v10 = vld [vmem:[#allocation6] sm:$0xf]  ;;  %v471_v11 = vld [vmem:[#allocation6 + $0x14] sm:$0xf]  ;;  %v453_v12 = vld [vmem:[#allocation6 + $0x18] sm:$0xf0]  ;;  %v439_v13 = vor.u32 %v468_v9, %v438_v8 }
  0x12   :  { %152 = vrot.lane.b32.xlu1 %v444_v5, %s592_s0  ;;  %v467_v14 = vld [vmem:[#allocation6 + $0x4] sm:$0xf0]  ;;  %v469_v15 = vld [vmem:[#allocation6 + $0x4] sm:$0xf]  ;;  %v445_v16 = vld [vmem:[#allocation6 + $0x8] sm:$0xf0]  ;;  %v133_v17 = vpack.c.b16 %v132_v7, %v132_v7  ;;  %v456_v19 = vor.u32 %v471_v11, %v453_v12 }
  0x13   :  { %86 = vmatpush.bf16.msra.mxu0 %v439_v13  ;;  %v435_v18 = vor.u32 %v467_v14, %v434_v10  ;;  %v448_v20 = vor.u32 %v469_v15, %v445_v16  ;;  %v59_v21 = vld [vmem:[#allocation3] sm:$0xf]  ;;  %vm76_vm0 = vcmask 261120   ;;  %v460_v22 = vld [vmem:[#allocation6 + $0x4] sm:$0xf]  ;;  %s594_s28 = smov 64  }
  0x14   :  { %134 = vrot.lane.b32.xlu2 %v133_v17, %s593_s2  ;;  %v473_v23 = vld [vmem:[#allocation6 + $0x8] sm:$0xf0]  ;;  %v94_v25 = vunpack.c.l.b16 %v59_v21  ;;  %v464_v27 = vld [vmem:[#allocation6 + $0x14] sm:$0xf]  ;;  %v474_v28 = vld [vmem:[#allocation6 + $0x18] sm:$0xf0] }
  0x15   :  { %v461_v24 = vor.u32 %v473_v23, %v460_v22  ;;  %v465_v29 = vor.u32 %v474_v28, %v464_v27  ;;  %v204_v30 = vld [vmem:[#allocation3] sm:$0xf]  ;;  %vm120_vm1 = vcmask 7168   ;;  %vm122_vm2 = vcmask 15360   ;;  %s595_s29 = smov 3   ;;  %s596_s30 = smov [#allocation9]  }
  0x16   :  { %v95_v26 = vpack.c.b16 %v94_v25, %v94_v25  ;;  %v210_v31 = vunpack.c.l.b16 %v204_v30  ;;  %v246_v53 = vunpack.c.l.bf16 %v204_v30  ;;  %vm124_vm3 = vcmask 23552   ;;  %v258_v11 = vld [vmem:[#allocation8] sm:$0x3f]  ;;  %s419_s4 = sshll.u32 %s596_s30, 4  ;;  %s421_s7 = sshll.u32 %s654_s3, 4  ;;  %s420_s4 = int_to_ptr.vmem [resolvable:$true] %s419_s4  ;;  %s422_s7 = int_to_ptr.hbm [resolvable:$true] %s421_s7 }
  0x17   :  { %87 = vmatpush.bf16.msra.mxu0 %v435_v18  ;;  %vm263_vm4 = vcmask 1045504   ;;  %vm202_vm5 = vcmask 39960   ;;  %vm255_vm6 = vcmask 48168   ;;  %vm259_vm7 = vcmask 48128  }
  0x18   :  { %v211_v33 = vpack.c.b16 %v210_v31, %v210_v31  ;;  %v265_v12 = vsel %vm263_vm4, %v258_v11, 0 }
  0x19   :  { %158 = vrot.lane.b32.xlu0 %v456_v19, %s592_s0  ;;  %v282_v13 = vand.u32 4294901760, %v265_v12 }
  0x1a   :  { %154 = vrot.lane.b32.xlu1 %v448_v20, %s592_s0  ;;  %440 = vmatmul.msk.bf16.vlgmr.msra.gmra.mxu0 %vm76_vm0, %v59_v21 }
  0x1b   :  { %v309_v14 = vsub.f32 %v265_v12, %v282_v13  ;;  %359 = vmatpush.msrb.mxu0 %v282_v13  ;;  %283 = vmatpush.msra.mxu3 %v282_v13 }
  0x1c   :  { %226 = vrot.lane.b32.xlu2 %v465_v29, %s593_s2 }
  0x1d   :  { %v310_v15 = vand.u32 4294901760, %v309_v14 }
  0x1f   :  { %v311_v16 = vsub.f32 %v309_v14, %v310_v15 }
  0x21   :  { %224 = vrot.lane.b32.xlu0 %v461_v24, %s593_s2 }
  0x22   :  { %212 = vrot.lane.b32.xlu1 %v211_v33, %s594_s28 }
  0x24   :  { %181 = vrot.lane.b32.xlu2 %v133_v17, %s594_s28  ;;  %v312_v17 = vand.u32 4294901760, %v311_v16 }
  0x26   :  { %313 = vmatpush.msrb.mxu3 %v312_v17 }
  0x29   :  { %96 = vrot.lane.b32.xlu0 %v95_v26, %s593_s2 }
  0x6e   :  { %v135_v39 = vpop.permute.xlu2 %134 }
  0x76   :  { %v227_v46 = vpop.permute.xlu2 %226 }
  0x77   :  { %239 = vmatpush.bf16.msra.mxu2 %v227_v46 }
  0x7e   :  { %v182_v47 = vpop.permute.xlu2 %181 }
  0x7f   :  { %v185_v48 = vunpack.c.l.bf16 %v182_v47 }
  0x83   :  { %v157_v32 = vpop.permute.xlu0 %156 }
  0x84   :  { %v153_v34 = vpop.permute.xlu1 %152 }
  0x8b   :  { %v159_v35 = vpop.permute.xlu0 %158 }
  0x8c   :  { %v162_v36 = vsel %vm76_vm0, %v157_v32, %v159_v35  ;;  %v155_v37 = vpop.permute.xlu1 %154 }
  0x8d   :  { %174 = vmatpush.bf16.msra.mxu1 %v162_v36  ;;  %v161_v38 = vsel %vm76_vm0, %v153_v34, %v155_v37 }
  0x91   :  { %175 = vmatpush.bf16.msra.mxu1 %v161_v38 }
  0x93   :  { %v225_v40 = vpop.permute.xlu0 %224 }
  0x94   :  { %457 = vmatmul.msk.bf16.vlgmr.msra.gmra.mxu1 %vm76_vm0, %v135_v39  ;;  %240 = vmatpush.bf16.msra.mxu2 %v225_v40  ;;  %v213_v58 = vpop.permute.xlu1 %212 }
  0x95   :  { %385 = vmatpush.msrb.mxu1 %v310_v15 }
  0x97   :  { %v89_v41 = vpop.f32.mrf.mxu0  ;;  %466 = vmatmul.msk.bf16.vlgmr.msra.gmra.mxu2 %vm76_vm0, %v213_v58 }
  0x98   :  { %407 = vmatpush.msrb.mxu2 %v282_v13 }
  0x9b   :  { %v97_v42 = vpop.permute.xlu0 %96 }
  0x9c   :  { %v102_v43 = vunpack.c.l.bf16 %v97_v42 }
  0x9e   :  { %v103_v44 = vmul.f32 %v102_v43, %v89_v41 }
  0x9f   :  { %v91_v45 = vpop.f32.mrf.mxu0 }
  0xa0   :  { %114 = vrot.lane.b32.xlu0 %v103_v44, %s594_s28  ;;  %108 = vrot.lane.b32.xlu2 %v103_v44, %s593_s2  ;;  %v104_v59 = vsel %vm76_vm0, %v103_v44, 0.0 }
  0xfa   :  { %v109_v52 = vpop.permute.xlu2 %108 }
  0xfb   :  { %v111_v55 = vsel %vm76_vm0, %v109_v52, 0.0 }
 0x111   :  { %v177_v49 = vpop.f32.mrf.mxu1 }
 0x112   :  { %v186_v50 = vmul.f32 %v185_v48, %v177_v49  ;;  %v115_v56 = vpop.permute.xlu0 %114 }
 0x113   :  { %v117_v57 = vsel %vm76_vm0, %v115_v56, 0.0 }
 0x114   :  { %191 = vrot.lane.b32.xlu1 %v186_v50, %s593_s2  ;;  %v187_v51 = vsel %vm76_vm0, %v186_v50, 0.0 }
 0x115   :  { %188 = vadd.xlane.f32.xlu2 %v187_v51 }
 0x119   :  { %v179_v54 = vpop.f32.mrf.mxu1 }
 0x11a   :  { %v242_v63 = vpop.f32.mrf.mxu2 }
 0x11c   :  { %248 = vrot.lane.b32.xlu1 %v246_v53, %s592_s0 }
 0x11d   :  { %112 = vadd.xlane.f32.xlu2 %v111_v55 }
 0x122   :  { %v244_v2 = vpop.f32.mrf.mxu2 }
 0x125   :  { %118 = vadd.xlane.f32.xlu2 %v117_v57 }
 0x146   :  { %105 = vadd.xlane.f32.xlu1 %v104_v59 }
 0x186   :  { %v192_v60 = vpop.permute.xlu1 %191 }
 0x187   :  { %v194_v61 = vsel %vm76_vm0, %v192_v60, 0.0 }
 0x188   :  { %195 = vadd.xlane.f32.xlu0 %v194_v61  ;;  %v189_v62 = vpop.xlane.xlu2 %188 }
 0x18e   :  { %v249_v1 = vpop.permute.xlu1 %248 }
 0x18f   :  { %v251_v7 = vmul.f32 %v249_v1, %v242_v63 }
 0x190   :  { %v113_v0 = vpop.xlane.xlu2 %112 }
 0x191   :  { %v252_v8 = vsel %vm76_vm0, %v251_v7, 0.0 }
 0x192   :  { %253 = vadd.xlane.f32.xlu1 %v252_v8 }
 0x198   :  { %v119_v3 = vpop.xlane.xlu2 %118 }
 0x1b9   :  { %v106_v4 = vpop.xlane.xlu1 %105 }
 0x1ba   :  { %v121_v5 = vsel %vm120_vm1, %v106_v4, %v113_v0 }
 0x1bb   :  { %v123_v6 = vsel %vm122_vm2, %v121_v5, %v119_v3 }
 0x1bc   :  { %125 = vst.msk [vmem:[#allocation2] sm:$0xff] %vm124_vm3, %v123_v6 }
 0x1fb   :  { %v196_v9 = vpop.xlane.xlu0 %195 }
 0x1fc   :  { %v197_v10 = vsel %vm120_vm1, %v189_v62, %v196_v9 }
 0x1fd   :  { %199 = vrot.lane.b32.xlu0 %v197_v10, %s595_s29 }
 0x205   :  { %v254_v18 = vpop.xlane.xlu1 %253 }
 0x26f   :  { %v200_v19 = vpop.permute.xlu0 %199 }
 0x270   :  { %203 = vst.msk [vmem:[#allocation2] sm:$0xff] %vm202_vm5, %v200_v19 }
 0x271   :  { %256 = vst.msk [vmem:[#allocation2] sm:$0xff] %vm255_vm6, %v254_v18 }
 0x278   :  { %v257_v20 = vld [vmem:[#allocation2] sm:$0xff] }
 0x279   :  { %v261_v21 = vsel %vm259_vm7, %v257_v20, 0 }
 0x27a   :  { %v284_v22 = vand.u32 4294901760, %v261_v21 }
 0x27c   :  { %387 = vmatmul.f32.vlgmr.msrb.gmra.mxu1 %v284_v22  ;;  %409 = vmatmul.f32.vlgmr.msrb.gmra.mxu2 %v284_v22  ;;  %v285_v23 = vsub.f32 %v261_v21, %v284_v22 }
 0x27e   :  { %v286_v24 = vand.u32 4294901760, %v285_v23 }
 0x280   :  { %363 = vmatmul.f32.vlgmr.msrb.gmra.mxu0 %v286_v24  ;;  %v287_v25 = vsub.f32 %v285_v23, %v286_v24 }
 0x282   :  { %v288_v26 = vand.u32 4294901760, %v287_v25 }
 0x284   :  { %289 = vmatmul.f32.vlgmr.msra.gmra.mxu3 %v288_v26 }
 0x285   :  { %336 = vmatpush.msra.mxu3 %v309_v14 }
 0x28c   :  { %315 = vmatmul.f32.vlgmr.msrb.gmra.mxu3 %v284_v22 }
 0x294   :  { %339 = vmatmul.f32.vlgmr.msra.gmra.mxu3 %v285_v23 }
 0x2f9   :  { %v388_v34 = vpop.f32.mrf.mxu1 }
 0x2fd   :  { %v364_v32 = vpop.f32.mrf.mxu0 }
 0x2ff   :  { %v410_v36 = vpop.f32.mrf.mxu2 }
 0x307   :  { %v290_v27 = vpop.f32.mrf.mxu3 }
 0x30f   :  { %v316_v28 = vpop.f32.mrf.mxu3 }
 0x310   :  { %v317_v29 = vadd.f32 %v316_v28, %v290_v27 }
 0x317   :  { %v340_v30 = vpop.f32.mrf.mxu3 }
 0x318   :  { %v341_v31 = vadd.f32 %v340_v30, %v317_v29 }
 0x31a   :  { %v365_v33 = vadd.f32 %v364_v32, %v341_v31 }
 0x31c   :  { %v389_v35 = vadd.f32 %v388_v34, %v365_v33 }
 0x31e   :  { %v411_v37 = vadd.f32 %v410_v36, %v389_v35 }
 0x320   :  { %413 = vst [vmem:[#allocation9] sm:$0xff] %v411_v37 }
 0x321   :  { %424 = dma.vmem_to_hbm [thread:$0]  %s420_s4, 128, %s422_s7, [#allocation5]  }
 0x322   :  { %585 = dma.done.wait [#allocation5], 128  }
 0x323   :  { %586 = vsyncadd [#allocation5], 4294967168 }
 0x324   :  { %429 = vsyncpa [#allocation4], 1 }
 0x325   :  { %430 = vsyncpa [#allocation7], 1 }
 0x326   :  { %431 = vsyncpa [#allocation5], 1 }

</bundles_post_ra>
